<compile_context>
chip_gen: v7x
topology: tpu7x:2x2x1
jax: 0.10.0
libtpu: 0.0.40
codegen_flags: <defaults>
</compile_context>

<pallas_src>
import math

import jax
import jax.numpy as jnp
from jax import lax
from jax.experimental import pallas as pl
from jax.experimental.pallas import tpu as pltpu


def _round_up(x: int, m: int) -> int:
    return ((x + m - 1) // m) * m


def _sublane_multiple(dtype) -> int:
    # Minimum second-to-last block dim for this dtype: f32 -> 8, bf16 -> 16, i8 -> 32.
    return max(8, 32 // jnp.dtype(dtype).itemsize)


def _make_kernel(*, size, padding_idx, smoothing, n_rows, tn, tv,
                 grid_n, grid_v, store_true_dist, td_dtype):
    confidence = 1.0 - smoothing
    smooth_val = smoothing / (size - 2 if size > 2 else 1)
    # log(true_dist) only ever takes these two nonzero values -> trace-time constants.
    log_conf = math.log(confidence) if confidence > 0.0 else 0.0
    log_smooth = math.log(smooth_val) if smooth_val > 0.0 else 0.0
    need_col_mask = grid_v * tv > size      # ragged vocab edge block
    need_row_mask = grid_n * tn > n_rows    # ragged row edge block
    n_strips = tv // 128

    def kernel(x_ref, tgt_ref, *rest):
        if store_true_dist:
            td_ref, rowloss_ref, acc_ref = rest
        else:
            rowloss_ref, acc_ref = rest

        i = pl.program_id(0)           # row-tile index ("parallel")
        j = pl.program_id(1)           # vocab-tile index (reduction axis)

        @pl.when(j == 0)
        def _init():                   # per-row-tile lane-dense accumulator init
            acc_ref[...] = jnp.zeros_like(acc_ref)

        x = x_ref[...].astype(jnp.float32)   # (tn, tv): upcast per-tile (native dtype read)
        tgt = tgt_ref[...]                   # (tn, 1)  int32

        # global column indices of this vocab tile
        col = lax.broadcasted_iota(jnp.int32, (tn, tv), 1) + j * tv

        is_tgt = col == tgt                                   # scatter position
        zero = (tgt == jnp.int32(padding_idx)) | (col == jnp.int32(padding_idx))
        if need_col_mask:
            zero = zero | (col >= jnp.int32(size))
        if need_row_mask:
            row = lax.broadcasted_iota(jnp.int32, (tn, 1), 0) + i * tn
            zero = zero | (row >= jnp.int32(n_rows))

        base = jnp.where(is_tgt, jnp.float32(confidence), jnp.float32(smooth_val))
        if store_true_dist:
            td_ref[...] = jnp.where(zero, jnp.float32(0.0), base).astype(td_dtype)

        # KLDivLoss(sum): td * (log td - x); log td is a trace-time constant.
        # Mask the contribution itself so undefined data in ragged edge blocks
        # (or -inf log-probs at masked positions) cannot poison the sum via 0*inf.
        log_td = jnp.where(is_tgt, jnp.float32(log_conf), jnp.float32(log_smooth))
        contrib = jnp.where(zero, jnp.float32(0.0), base * (log_td - x))

        # Lane-dense accumulation: fold the (tn, tv) tile into (tn, 128) with
        # pure VPU adds (128-wide strips, no cross-lane traffic per step).
        partial = contrib[:, 0:128]
        for s in range(1, n_strips):
            partial = partial + contrib[:, s * 128:(s + 1) * 128]
        acc_ref[...] += partial

        @pl.when(j == pl.num_programs(1) - 1)
        def _finalize():               # single XLU reduce + (tn,1) store per row-tile
            rowloss_ref[...] = jnp.sum(acc_ref[...], axis=1, keepdims=True)

    return kernel


def label_smoothing_forward(x, target, *, size, padding_idx, smoothing,
                            tile_n=256, tile_v=2048, store_true_dist=True,
                            td_dtype=None):
    """x: (N, size) log-probs (any float dtype, typically bf16 or f32);
    target: (N,) int. Returns (loss_scalar, true_dist_or_None)."""
    assert x.shape[1] == size
    N, V = x.shape
    x = jnp.asarray(x)
    if td_dtype is None:
        td_dtype = x.dtype                      # native-width writeback by default
    tgt = target.astype(jnp.int32).reshape(N, 1)

    # Tile sizes: tn multiple of the dtype sublane minimum, tv multiple of 128.
    sub = _sublane_multiple(x.dtype)
    if store_true_dist:
        sub = max(sub, _sublane_multiple(td_dtype))
    tn = min(_round_up(tile_n, sub), _round_up(N, sub))
    tv = min(_round_up(tile_v, 128), _round_up(V, 128))

    # v7x megacore: ensure the "parallel" row axis has >= 2 tiles when N allows,
    # so both TensorCores get work (no-op cost on v5e/v6e: same bytes).
    if pl.cdiv(N, tn) < 2 and N > sub:
        tn = _round_up(pl.cdiv(N, 2), sub)

    grid = (pl.cdiv(N, tn), pl.cdiv(V, tv))     # no wrapper-side padding / slicing

    kernel = _make_kernel(size=size, padding_idx=padding_idx, smoothing=smoothing,
                          n_rows=N, tn=tn, tv=tv, grid_n=grid[0], grid_v=grid[1],
                          store_true_dist=store_true_dist, td_dtype=td_dtype)

    rowloss_shape = jax.ShapeDtypeStruct((N, 1), jnp.float32)
    rowloss_spec = pl.BlockSpec((tn, 1), lambda i, j: (i, 0))   # written once per row-tile

    if store_true_dist:
        out_shape = (jax.ShapeDtypeStruct((N, V), td_dtype), rowloss_shape)
        out_specs = (pl.BlockSpec((tn, tv), lambda i, j: (i, j)), rowloss_spec)
    else:
        out_shape = rowloss_shape
        out_specs = rowloss_spec

    # Double-buffered VMEM footprint estimate; raise the scoped limit only if
    # the default (16 MiB v5e / 32 MiB v6e,v7x) might be exceeded.
    td_bytes = jnp.dtype(td_dtype).itemsize if store_true_dist else 0
    vmem_est = 2 * tn * tv * (x.dtype.itemsize + td_bytes) + tn * 128 * 4 + 16 * tn * 4
    vmem_limit = (vmem_est + (2 << 20)) if vmem_est > (12 << 20) else None

    result = pl.pallas_call(
        kernel,
        grid=grid,
        in_specs=[
            pl.BlockSpec((tn, tv), lambda i, j: (i, j)),   # x tile (native dtype)
            pl.BlockSpec((tn, 1), lambda i, j: (i, 0)),    # target rows (resident over j)
        ],
        out_specs=out_specs,
        out_shape=out_shape,
        scratch_shapes=[pltpu.VMEM((tn, 128), jnp.float32)],   # lane-dense row-loss partials
        compiler_params=pltpu.CompilerParams(
            # row-tile axis is embarrassingly parallel (v7x 2-TC sharding);
            # vocab axis carries the per-row loss accumulator.
            dimension_semantics=("parallel", "arbitrary"),
            vmem_limit_bytes=vmem_limit,
        ),
    )(x, tgt)

    if store_true_dist:
        true_dist, row_loss = result
    else:
        row_loss = result
        true_dist = None

    loss = jnp.sum(row_loss)
    return loss, true_dist


def _reference(x, target, *, size, padding_idx, smoothing):
    confidence = 1.0 - smoothing
    smooth_val = smoothing / (size - 2 if size > 2 else 1)
    N, V = x.shape
    td = jnp.full((N, V), smooth_val, jnp.float32)
    td = td.at[jnp.arange(N), target].set(confidence)
    td = td.at[:, padding_idx].set(0.0)
    td = jnp.where((target == padding_idx)[:, None], 0.0, td)
    safe = jnp.where(td > 0, td, 1.0)
    loss = jnp.sum(jnp.where(td > 0, td * (jnp.log(safe) - x), 0.0))
    return loss, td


if __name__ == "__main__":
    size = 300          # vocab size (x.size(1)); deliberately not a multiple of 128
    padding_idx = 0
    smoothing = 0.1
    N = 24              # number of (batch*seq) tokens; not a multiple of 16 either

    key = jax.random.PRNGKey(0)
    k1, k2 = jax.random.split(key)
    logits = jax.random.normal(k1, (N, size), jnp.float32)
    x = jax.nn.log_softmax(logits, axis=-1)            # log-probs like NLL input
    target = jax.random.randint(k2, (N,), 0, size, jnp.int32)
    target = target.at[3].set(padding_idx)             # include padded rows
    target = target.at[17].set(padding_idx)

    ref_loss, ref_td = _reference(
        x, target, size=size, padding_idx=padding_idx, smoothing=smoothing)

    # 1) f32 input, default tiles: ragged row (24 % 16) and vocab (300 % 384) edges
    loss, true_dist = label_smoothing_forward(
        x, target, size=size, padding_idx=padding_idx, smoothing=smoothing)
    jax.block_until_ready((loss, true_dist))
    assert true_dist.dtype == jnp.float32
    assert jnp.allclose(true_dist, ref_td, atol=1e-6), "true_dist mismatch (default tiles)"
    assert jnp.allclose(loss, ref_loss, rtol=1e-5, atol=1e-4), "loss mismatch (default tiles)"

    # 2) forced small tiles -> multi-tile grid (3 row-tiles x 3 vocab-tiles, ragged both ways)
    loss_t, true_dist_t = label_smoothing_forward(
        x, target, size=size, padding_idx=padding_idx, smoothing=smoothing,
        tile_n=8, tile_v=128)
    jax.block_until_ready((loss_t, true_dist_t))
    assert jnp.allclose(true_dist_t, ref_td, atol=1e-6), "true_dist mismatch (tiled)"
    assert jnp.allclose(loss_t, ref_loss, rtol=1e-5, atol=1e-4), "loss mismatch (tiled)"

    # 3) loss-only path (no true_dist writeback at all)
    loss_only, td_none = label_smoothing_forward(
        x, target, size=size, padding_idx=padding_idx, smoothing=smoothing,
        tile_n=8, tile_v=128, store_true_dist=False)
    jax.block_until_ready(loss_only)
    assert td_none is None
    assert jnp.allclose(loss_only, ref_loss, rtol=1e-5, atol=1e-4), "loss mismatch (loss-only)"

    # 4) bf16 log-probs read in native dtype, bf16 true_dist writeback (f32 loss math)
    x_bf16 = x.astype(jnp.bfloat16)
    ref_loss_b, _ = _reference(
        x_bf16.astype(jnp.float32), target,
        size=size, padding_idx=padding_idx, smoothing=smoothing)
    loss_b, td_b = label_smoothing_forward(
        x_bf16, target, size=size, padding_idx=padding_idx, smoothing=smoothing)
    jax.block_until_ready((loss_b, td_b))
    assert td_b.dtype == jnp.bfloat16
    assert jnp.allclose(td_b.astype(jnp.float32),
                        ref_td.astype(jnp.bfloat16).astype(jnp.float32),
                        atol=1e-3), "true_dist mismatch (bf16)"
    assert jnp.allclose(loss_b, ref_loss_b, rtol=1e-3, atol=1e-3), "loss mismatch (bf16)"

    print("KERNEL_OK")
</pallas_src>

<mosaic_0001>
module attributes {stable_mosaic.version = 11 : i64} {
  func.func @kernel(%arg0: i32, %arg1: i32, %arg2: memref<16x384xf32, #tpu.memory_space<vmem>>, %arg3: memref<16x1xi32, #tpu.memory_space<vmem>>, %arg4: memref<16x384xf32, #tpu.memory_space<vmem>>, %arg5: memref<16x1xf32, #tpu.memory_space<vmem>>, %arg6: memref<16x128xf32, #tpu.memory_space<vmem>>) attributes {dimension_semantics = [#tpu.dimension_semantics<parallel>, #tpu.dimension_semantics<arbitrary>], iteration_bounds = array<i64: 2, 1>, scalar_prefetch = 0 : i64, scratch_operands = 1 : i64, tpu.core_type = #tpu.core_type<tc>, window_params = [{transform_indices = @transform_0, window_bounds = array<i64: 16, 384>}, {transform_indices = @transform_1, window_bounds = array<i64: 16, 1>}, {transform_indices = @transform_2, window_bounds = array<i64: 16, 384>}, {transform_indices = @transform_3, window_bounds = array<i64: 16, 1>}]} {
    %c0_i32 = arith.constant 0 : i32
    %0 = arith.cmpi eq, %arg1, %c0_i32 : i32
    %1 = arith.extui %0 : i1 to i32
    %c0_i32_0 = arith.constant 0 : i32
    %2 = arith.cmpi ne, %1, %c0_i32_0 : i32
    scf.if %2 {
      %cst_19 = arith.constant 0.000000e+00 : f32
      %52 = vector.broadcast %cst_19 : f32 to vector<16x128xf32>
      %c0_20 = arith.constant 0 : index
      %c0_21 = arith.constant 0 : index
      %53 = vector.load %arg6[%c0_20, %c0_21] : memref<16x128xf32, #tpu.memory_space<vmem>>, vector<16x128xf32>
      tpu.vector_store %arg6[%c0_20, %c0_21], %52 {strides = array<i32>} : memref<16x128xf32, #tpu.memory_space<vmem>>, vector<16x128xf32>,
    } else {
    }
    %c0 = arith.constant 0 : index
    %c0_1 = arith.constant 0 : index
    %3 = vector.load %arg2[%c0, %c0_1] : memref<16x384xf32, #tpu.memory_space<vmem>>, vector<16x384xf32>
    %c0_2 = arith.constant 0 : index
    %c0_3 = arith.constant 0 : index
    %4 = vector.load %arg3[%c0_2, %c0_3] : memref<16x1xi32, #tpu.memory_space<vmem>>, vector<16x1xi32>
    %5 = tpu.iota {dimensions = array<i32: 1>} : vector<16x384xi32>
    %c384_i32 = arith.constant 384 : i32
    %6 = arith.muli %arg1, %c384_i32 : i32
    %7 = vector.broadcast %6 : i32 to vector<16x384xi32>
    %8 = arith.addi %5, %7 : vector<16x384xi32>
    %9 = vector.broadcast %4 : vector<16x1xi32> to vector<16x384xi32>
    %10 = arith.cmpi eq, %8, %9 : vector<16x384xi32>
    %c0_i32_4 = arith.constant 0 : i32
    %11 = vector.broadcast %c0_i32_4 : i32 to vector<16x1xi32>
    %12 = arith.cmpi eq, %4, %11 : vector<16x1xi32>
    %c0_i32_5 = arith.constant 0 : i32
    %13 = vector.broadcast %c0_i32_5 : i32 to vector<16x384xi32>
    %14 = arith.cmpi eq, %8, %13 : vector<16x384xi32>
    %15 = vector.broadcast %12 : vector<16x1xi1> to vector<16x384xi1>
    %16 = arith.ori %15, %14 : vector<16x384xi1>
    %c300_i32 = arith.constant 300 : i32
    %17 = vector.broadcast %c300_i32 : i32 to vector<16x384xi32>
    %18 = arith.cmpi sge, %8, %17 : vector<16x384xi32>
    %19 = arith.ori %16, %18 : vector<16x384xi1>
    %20 = tpu.iota {dimensions = array<i32: 0>} : vector<16x1xi32>
    %c16_i32 = arith.constant 16 : i32
    %21 = arith.muli %arg0, %c16_i32 : i32
    %22 = vector.broadcast %21 : i32 to vector<16x1xi32>
    %23 = arith.addi %20, %22 : vector<16x1xi32>
    %c24_i32 = arith.constant 24 : i32
    %24 = vector.broadcast %c24_i32 : i32 to vector<16x1xi32>
    %25 = arith.cmpi sge, %23, %24 : vector<16x1xi32>
    %26 = vector.broadcast %25 : vector<16x1xi1> to vector<16x384xi1>
    %27 = arith.ori %19, %26 : vector<16x384xi1>
    %cst = arith.constant 0.899999976 : f32
    %cst_6 = arith.constant 3.35570483E-4 : f32
    %28 = vector.broadcast %cst : f32 to vector<16x384xf32>
    %29 = vector.broadcast %cst_6 : f32 to vector<16x384xf32>
    %30 = arith.select %10, %28, %29 : vector<16x384xi1>, vector<16x384xf32>
    %cst_7 = arith.constant 0.000000e+00 : f32
    %31 = vector.broadcast %cst_7 : f32 to vector<16x384xf32>
    %32 = arith.select %27, %31, %30 : vector<16x384xi1>, vector<16x384xf32>
    %c0_8 = arith.constant 0 : index
    %c0_9 = arith.constant 0 : index
    %33 = vector.load %arg4[%c0_8, %c0_9] : memref<16x384xf32, #tpu.memory_space<vmem>>, vector<16x384xf32>
    tpu.vector_store %arg4[%c0_8, %c0_9], %32 {strides = array<i32>} : memref<16x384xf32, #tpu.memory_space<vmem>>, vector<16x384xf32>,
    %cst_10 = arith.constant -0.105360515 : f32
    %cst_11 = arith.constant -7.99967861 : f32
    %34 = vector.broadcast %cst_10 : f32 to vector<16x384xf32>
    %35 = vector.broadcast %cst_11 : f32 to vector<16x384xf32>
    %36 = arith.select %10, %34, %35 : vector<16x384xi1>, vector<16x384xf32>
    %37 = arith.subf %36, %3 : vector<16x384xf32>
    %38 = arith.mulf %30, %37 : vector<16x384xf32>
    %cst_12 = arith.constant 0.000000e+00 : f32
    %39 = vector.broadcast %cst_12 : f32 to vector<16x384xf32>
    %40 = arith.select %27, %39, %38 : vector<16x384xi1>, vector<16x384xf32>
    %41 = vector.extract_strided_slice %40 {offsets = [0, 0], sizes = [16, 128], strides = [1, 1]} : vector<16x384xf32> to vector<16x128xf32>
    %42 = vector.extract_strided_slice %40 {offsets = [0, 128], sizes = [16, 128], strides = [1, 1]} : vector<16x384xf32> to vector<16x128xf32>
    %43 = arith.addf %41, %42 : vector<16x128xf32>
    %44 = vector.extract_strided_slice %40 {offsets = [0, 256], sizes = [16, 128], strides = [1, 1]} : vector<16x384xf32> to vector<16x128xf32>
    %45 = arith.addf %43, %44 : vector<16x128xf32>
    %c0_13 = arith.constant 0 : index
    %c0_14 = arith.constant 0 : index
    %46 = vector.load %arg6[%c0_13, %c0_14] : memref<16x128xf32, #tpu.memory_space<vmem>>, vector<16x128xf32>
    %47 = arith.addf %46, %45 : vector<16x128xf32>
    %c0_15 = arith.constant 0 : index
    %c0_16 = arith.constant 0 : index
    %48 = vector.load %arg6[%c0_15, %c0_16] : memref<16x128xf32, #tpu.memory_space<vmem>>, vector<16x128xf32>
    tpu.vector_store %arg6[%c0_15, %c0_16], %47 {strides = array<i32>} : memref<16x128xf32, #tpu.memory_space<vmem>>, vector<16x128xf32>,
    %c0_i32_17 = arith.constant 0 : i32
    %49 = arith.cmpi eq, %arg1, %c0_i32_17 : i32
    %50 = arith.extui %49 : i1 to i32
    %c0_i32_18 = arith.constant 0 : i32
    %51 = arith.cmpi ne, %50, %c0_i32_18 : i32
    scf.if %51 {
      %c0_19 = arith.constant 0 : index
      %c0_20 = arith.constant 0 : index
      %52 = vector.load %arg6[%c0_19, %c0_20] : memref<16x128xf32, #tpu.memory_space<vmem>>, vector<16x128xf32>
      %cst_21 = arith.constant dense<0.000000e+00> : vector<16xf32>
      %53 = vector.multi_reduction <add>, %52, %cst_21 [1] : vector<16x128xf32> to vector<16xf32>
      %54 = vector.shape_cast %53 : vector<16xf32> to vector<16x1xf32>
      %c0_22 = arith.constant 0 : index
      %c0_23 = arith.constant 0 : index
      %55 = vector.load %arg5[%c0_22, %c0_23] : memref<16x1xf32, #tpu.memory_space<vmem>>, vector<16x1xf32>
      tpu.vector_store %arg5[%c0_22, %c0_23], %54 {strides = array<i32>} : memref<16x1xf32, #tpu.memory_space<vmem>>, vector<16x1xf32>,
    } else {
    }
    return
  }
  func.func @transform_0(%arg0: i32, %arg1: i32) -> (i32, i32) {
    %c0_i32 = arith.constant 0 : i32
    return %arg0, %arg1 : i32, i32
  }
  func.func @transform_1(%arg0: i32, %arg1: i32) -> (i32, i32) {
    %c0_i32 = arith.constant 0 : i32
    %c0_i32_0 = arith.constant 0 : i32
    return %arg0, %c0_i32 : i32, i32
  }
  func.func @transform_2(%arg0: i32, %arg1: i32) -> (i32, i32) {
    %c0_i32 = arith.constant 0 : i32
    return %arg0, %arg1 : i32, i32
  }
  func.func @transform_3(%arg0: i32, %arg1: i32) -> (i32, i32) {
    %c0_i32 = arith.constant 0 : i32
    %c0_i32_0 = arith.constant 0 : i32
    return %arg0, %c0_i32 : i32, i32
  }
}

</mosaic_0001>

<bundles_post_ra>
// kernel: tpu_custom_call.1
= control target key start
LH: loop header
LB: loop body
LE: loop exit
PB: predicated region body
PF: predicated region fallthrough
CT: control target
= control target key end

     0   :  { %9 = vsyncpa [#allocation4], 0  ;;  %s1458_s0 = inlined_call_operand.hbm [shape: f32[24,300], index: 0, kind: input, shape index: {}]   ;;  %s1459_s1 = inlined_call_operand.vmem [shape: s32[24,1], index: 1, kind: input, shape index: {}]   ;;  %s1460_s2 = inlined_call_operand.hbm [shape: f32[24,300], index: 2, kind: output, shape index: {0}]   ;;  %s1461_s3 = inlined_call_operand.vmem [shape: f32[24,1], index: 3, kind: output, shape index: {1}]  }
   0x1   :  { %11 = vsyncpa [#allocation4 + $0x1], 0 }
   0x2   :  { %12 = vsyncpa [#allocation5], 0 }
   0x3   :  { %14 = vsyncpa [#allocation5 + $0x1], 0  ;;  %s1130_s12 = smov 0   ;;  %s1132_s13 = smov 0  }
   0x4   :  { %s1134_s14 = smov 0   ;;  %s1136_s15 = smov 0  }
   0x5   :  { %s1138_s16 = smov 0   ;;  %s1140_s17 = smov 0  }
   0x6 LB: > { %s750_s18 = sadd.s32 4294967295, %s1067_s17   ;;  %s751_s19 = sadd.s32 4294967294, %s1067_s17   ;;  %s1067_s17 = sphi %s1140_s17, %s20_s17   ;;  %s1063_s16 = sphi %s1138_s16, %s1480_s16   ;;  %s1059_s15 = sphi %s1136_s15, %s1479_s15   ;;  %s1055_s14 = sphi %s1134_s14, %s1478_s14   ;;  %s1051_s13 = sphi %s1132_s13, %s1477_s13   ;;  %s1047_s12 = sphi %s1130_s12, %s1476_s12  }
   0x7   : > { %s32_s20 = sadd.s32 1, %s1063_s16  ;;  %s41_s21 = sadd.s32 1, %s1055_s14 }
   0x8   : > { %p34_p0 = scmp.ge.s32.totalorder %s32_s20, 2  ;;  %p48_p1 = scmp.ne.s32.totalorder %s1055_s14, %s1051_s13 }
   0x9   : > { %p49_p2 = scmp.eq.s32.totalorder %s1067_s17, 0  ;;  %p54_p3 = scmp.ne.s32.totalorder %s1051_s13, %s1047_s12 }
   0xa   : > { %s1482_s20 = smov (%p34_p0, %s32_s20), 0  ;;  %p55_p5 = scmp.eq.s32.totalorder %s750_s18, 0 }
   0xb   : > { %p50_p4 = por %p49_p2, %p48_p1  ;;  %s36_s22 = ssub.s32 %s1063_s16, %s1482_s20 }
   0xc   : > { %p106_p6 = scmp.eq.s32.totalorder %s750_s18, 1  ;;  %p39_p7 = scmp.eq.s32.totalorder %s36_s22, 0 }
   0xd   : > { %p1173_p8 = por %p55_p5, %p54_p3  ;;  %p112_p10 = scmp.eq.s32.totalorder %s751_s19, 1 }
   0xe   : > { %p1177_p9 = por %p106_p6, %p48_p1  ;;  %p1462_p12 = scmp.ge.s32.totalorder %s1067_s17, 2 }
   0xf   : > { %s1182_s25 = scalar_select %p39_p7, %s1055_s14, %s41_s21  }
  0x10   : > { %p1184_p11 = por %p112_p10, %p54_p3  ;;  %154 = sbr.rel (%p1462_p12) target bundleno = 59 (0x3b), region = 16 }
  0x12   : > { %s1465_s26 = scalar_select %p1184_p11, 1, 0 }
  0x17   : > { %157 = sbr.rel (!%p50_p4) target bundleno = 59 (0x3b), region = 20  ;;  %s158_s27 = sand.u32 (%p50_p4), 1, %s1055_s14  }
  0x18   : > { %s754_s28 = sshll.u32 (%p50_p4), %s1063_s16, 1  ;;  %s793_s29 = smul.u32 (%p50_p4), 48, %s158_s27 }
  0x19   : > { %s165_s30 = ssub.s32 (%p50_p4), 3, %s754_s28  ;;  %s1196_s6 = scalar_lea.sflag (%p50_p4), [#allocation4], %s158_s27 }
  0x1a   : > { %p166_p13 = scmp.lt.s32.totalorder (%p50_p4), %s165_s30, 2  ;;  %s162_s7 = scalar_lea.vmem (%p50_p4), [#allocation3], %s793_s29 }
  0x1e   : > { %s1484_s30 = smov (!%p166_p13, %s165_s30), 2 }
  0x1f   : > { %s1193_s4 = smul.u32 384, %s1484_s30 }
  0x21   : > { %s171_s5 = ssub.s32 768, %s1193_s4 }
  0x22   : > { %172 = vsyncadd %s1196_s6, %s171_s5  ;;  %p757_p0 = scmp.ne.s32.totalorder %s1193_s4, 0  ;;  %s794_s8 = smul.u32 768, %s1063_s16 }
  0x23   : > { %s179_s9 = sshll.u32 %s162_s7, 4  ;;  %s929_s27 = scalar_lea.hbm %s1458_s0, 1152  ;;  %s1206_s9 = int_to_ptr.vmem [resolvable:$true] %s179_s9 }
  0x24   : > { %s1204_s18 = scalar_lea.hbm %s1458_s0, %s794_s8 }
  0x25   : > { %s925_s19 = scalar_lea.hbm %s1204_s18, %s1193_s4  ;;  %p930_p4 = scmp.lt.u32.totalorder %s1204_s18, %s1458_s0 }
  0x26   : > { %p926_p1 = scmp.ne.s32.totalorder %s1204_s18, %s925_s19  ;;  %p931_p5 = scmp.lt.u32.totalorder %s929_s27, %s925_s19 }
  0x27   : > { %p933_p7 = scmp.lt.u32.totalorder %s925_s19, %s1204_s18 }
  0x28   : > { %p927_p2 = pnand %p926_p1, %p757_p0  ;;  %p932_p6 = por %p931_p5, %p930_p4 }
  0x2a   : > { %p928_p3 = pneg %p927_p2  ;;  %p934_p10 = por %p933_p7, %p932_p6 }
  0x2c   : > { %p935_p13 = pnand %p934_p10, %p928_p3 }
  0x2e   : > { %938 = shalt.err (!%p935_p13)
}
  0x2f   : > { %s939_s30 = scalar_lea.vmem %s1206_s9, %s1193_s4  ;;  %s1101_s5 = smov [#allocation3]  }
  0x30   : > { %p940_p1 = scmp.ne.s32.totalorder %s1206_s9, %s939_s30  ;;  %s943_s7 = sshll.u32 %s1101_s5, 4  ;;  %s944_s7 = int_to_ptr.vmem [resolvable:$false] %s943_s7 }
  0x31   : > { %s945_s8 = scalar_lea.vmem %s944_s7, 1536  ;;  %p946_p11 = scmp.lt.s32.totalorder %s1206_s9, %s944_s7 }
  0x32   : > { %p941_p2 = pnand %p940_p1, %p757_p0  ;;  %p947_p4 = scmp.lt.s32.totalorder %s945_s8, %s939_s30 }
  0x34   : > { %p942_p12 = pneg %p941_p2  ;;  %p948_p5 = por %p947_p4, %p946_p11 }
  0x36   : > { %p949_p6 = pnand %p948_p5, %p942_p12 }
  0x38   : > { %952 = shalt.err (!%p949_p6)
}
  0x39   : > { %s1102_s10 = smov 384   ;;  %s1103_s11 = smov 24  }
  0x3a   : > { %185 = dma.hbm_to_vmem [thread:$0]  (%p757_p0), %s1204_s18, %s1193_s4, %s1206_s9, %s1196_s6, %s1102_s10, %s1102_s10, %s1103_s11  }
  0x3b PF: > { %p761_p3 = scmp.ge.s32.totalorder %s1067_s17, 1  ;;  %p204_p7 = scmp.lt.s32.totalorder %s1067_s17, 3 }
  0x3d   : > { %p205_p10 = pnand %p761_p3, %p204_p7 }
  0x3e   : > { %s1236_s19 = sand.u32 (!%p205_p10), 1, %s1051_s13  }
  0x3f   : > { %208 = sbr.rel (%p205_p10) target bundleno = 453 (0x1c5), region = 28  ;;  %s211_s22 = scalar_lea.sflag (!%p205_p10), [#allocation4], %s1236_s19 }
  0x40   : > { %s795_s21 = smul.u32 (!%p205_p10), 48, %s1236_s19 }
  0x42   : > { %s1242_s27 = scalar_lea.vmem (!%p205_p10), [#allocation3], %s795_s21 }
  0x46   : > { %1038 = dma.done.wait (%p1173_p8), %s211_s22, 768  }
  0x47   : > { %1040 = vsyncadd (%p1173_p8), %s211_s22, 4294966528  ;;  %s1249_s4 = sshll.u32 %s1059_s15, 1  ;;  %v1104_v0 = vmov 0   ;;  %v297_v5 = vlaneseq  ;;  %s765_s23 = sshll.u32 %s1059_s15, 4  ;;  %v289_v15 = vld [vmem:[%s1242_s27] sm:$0xff]  ;;  %v290_v16 = vld [vmem:[%s1242_s27 + $0x8] sm:$0xff] }
  0x48   : > { %923 = vset.pattern.permute.xlu0 %v1104_v0  ;;  %p262_p11 = scmp.lt.s32.totalorder %s1249_s4, 2  ;;  %924 = vset.pattern.permute.xlu1 %v1104_v0  ;;  %v352_v9 = vstv %s765_s23  ;;  %v291_v17 = vld [vmem:[%s1242_s27 + $0x10] sm:$0xff]  ;;  %v1105_v18 = vmov 0.00033557048   ;;  %v1106_v21 = vmov -7.9996786  }
  0x49   : > { %v349_v6 = vshrl.u32 %v297_v5, 7  ;;  %v1257_v7 = vand.u32 127, %v297_v5  ;;  %v292_v30 = vld [vmem:[%s1242_s27 + $0x18] sm:$0xff]  ;;  %v293_v31 = vld [vmem:[%s1242_s27 + $0x20] sm:$0xff]  ;;  %v294_v36 = vld [vmem:[%s1242_s27 + $0x28] sm:$0xff]  ;;  %s1315_s30 = scalar_lea.vmem [#allocation6], %s795_s21 }
  0x4a   : > { %s263_s6 = scalar_select %p262_p11, %s1249_s4, 2 }
  0x4b   : > { %v350_v8 = vadd.s32 8, %v349_v6  ;;  %v299_v10 = vadd.s32 128, %v1257_v7  ;;  %v1263_v11 = vadd.s32 256, %v1257_v7  ;;  %v353_v12 = vadd.s32 %v352_v9, %v349_v6  ;;  %s762_s5 = sshll.u32 %s1236_s19, 4  ;;  %s432_s8 = scalar_lea.sflag [#allocation5], %s1236_s19 }
  0x4c   : > { %s764_s9 = sshll.u32 %s263_s6, 3  ;;  %vm320_vm5 = vcmp.eq.s32.totalorder %v1257_v7, 0  ;;  %s1354_s7 = scalar_lea.vmem [#allocation7], %s762_s5  }
  0x4d   : > { %s265_s29 = scalar_lea.vmem %s1459_s1, %s764_s9  ;;  %v1265_v13 = vadd.s32 %v352_v9, %v350_v8  ;;  %vm341_vm6 = vcmp.ge.s32.totalorder %v1263_v11, 300  ;;  %vm355_vm7 = vcmp.ge.s32.totalorder %v353_v12, 24  ;;  %s445_s10 = ssub.s32 (%p1177_p9), 3, %s1249_s4 }
  0x4e   : > { %v295_v1 = vld [vmem:[%s265_s29] sm:$0xff]  ;;  %v296_v2 = vld [vmem:[%s265_s29 + $0x8] sm:$0xff]  ;;  %p446_p8 = scmp.lt.s32.totalorder (%p1177_p9), %s445_s10, 2 }
  0x4f   : > { %307 = vperm.xlu0 %923, %v295_v1   ;;  %vm318_vm0 = vcmp.eq.s32.totalorder %v295_v1, 0  ;;  %vm319_vm1 = vcmp.eq.s32.totalorder %v296_v2, 0  ;;  %vm356_vm8 = vcmp.ge.s32.totalorder %v1265_v13, 24 }
  0x50   : > { %v323_v3 = vsel %vm318_vm0, 1, %v1104_v0  ;;  %v324_v4 = vsel %vm319_vm1, 1, %v1104_v0 }
  0x51   : > { %326 = vperm.xlu1 %924, %v323_v3  }
  0x53   : > { %310 = vperm.xlu0 %923, %v296_v2  }
  0x55   : > { %329 = vperm.xlu1 %924, %v324_v4  }
  0xce   : > { %v308_v14 = vpop.permute.xlu0 %307 }
  0xcf   : > { %vm312_vm2 = vcmp.eq.s32.totalorder %v1257_v7, %v308_v14  ;;  %vm313_vm3 = vcmp.eq.s32.totalorder %v299_v10, %v308_v14  ;;  %vm314_vm4 = vcmp.eq.s32.totalorder %v1263_v11, %v308_v14 }
  0xd0   : > { %v367_v19 = vsel %vm312_vm2, 0.9, %v1105_v18  ;;  %v327_v20 = vpop.permute.xlu1 %326  ;;  %v385_v22 = vsel %vm312_vm2, -0.105360515, %v1106_v21  ;;  %v386_v23 = vsel %vm313_vm3, -0.105360515, %v1106_v21 }
  0xd1   : > { %v387_v24 = vsel %vm314_vm4, -0.105360515, %v1106_v21  ;;  %v391_v25 = vsub.f32 %v385_v22, %v289_v15  ;;  %v392_v26 = vsub.f32 %v386_v23, %v290_v16  ;;  %vm331_vm9 = vcmp.eq.s32.totalorder %v327_v20, 1 }
  0xd2   : > { %v393_v27 = vsub.f32 %v387_v24, %v291_v17  ;;  %v311_v28 = vpop.permute.xlu0 %310  ;;  %v368_v29 = vsel %vm313_vm3, 0.9, %v1105_v18  ;;  %vm333_vm10 = vmor %vm331_vm9, %vm320_vm5  ;;  %v369_v32 = vsel %vm314_vm4, 0.9, %v1105_v18 }
  0xd3   : > { %vm315_vm11 = vcmp.eq.s32.totalorder %v1257_v7, %v311_v28  ;;  %vm316_vm12 = vcmp.eq.s32.totalorder %v299_v10, %v311_v28  ;;  %vm317_vm13 = vcmp.eq.s32.totalorder %v1263_v11, %v311_v28  ;;  %v397_v33 = vmul.f32 %v391_v25, %v367_v19  ;;  %vm1291_vm14 = vmor %vm331_vm9, %vm341_vm6 }
  0xd4   : > { %v398_v34 = vmul.f32 %v392_v26, %v368_v29  ;;  %v370_v37 = vsel %vm315_vm11, 0.9, %v1105_v18  ;;  %v330_v38 = vpop.permute.xlu1 %329  ;;  %vm1297_vm15 = vmor %vm333_vm10, %vm355_vm7  ;;  %v371_v40 = vsel %vm316_vm12, 0.9, %v1105_v18  ;;  %v388_v41 = vsel %vm315_vm11, -0.105360515, %v1106_v21 }
  0xd5   : > { %v389_v42 = vsel %vm316_vm12, -0.105360515, %v1106_v21  ;;  %v399_v43 = vmul.f32 %v393_v27, %v369_v32  ;;  %vm1303_vm0 = vmor %vm331_vm9, %vm355_vm7  ;;  %v373_v45 = vsel %vm1297_vm15, 0.0, %v367_v19  ;;  %v390_v46 = vsel %vm317_vm13, -0.105360515, %v1106_v21 }
  0xd6   : > { %v394_v47 = vsub.f32 %v388_v41, %v292_v30  ;;  %v395_v48 = vsub.f32 %v389_v42, %v293_v31  ;;  %v374_v49 = vsel %vm1303_vm0, 0.0, %v368_v29  ;;  %379 = vst [vmem:[%s1315_s30] sm:$0xff] %v373_v45  ;;  %v404_v50 = vsel %vm1303_vm0, 0.0, %v398_v34  ;;  %vm1323_vm2 = vmor %vm1291_vm14, %vm355_vm7 }
  0xd7   : > { %v396_v51 = vsub.f32 %v390_v46, %v294_v36  ;;  %vm332_vm1 = vcmp.eq.s32.totalorder %v330_v38, 1  ;;  %380 = vst [vmem:[%s1315_s30 + $0x8] sm:$0xff] %v374_v49  ;;  %v375_v55 = vsel %vm1323_vm2, 0.0, %v369_v32  ;;  %v403_v56 = vsel %vm1297_vm15, 0.0, %v397_v33 }
  0xd8   : > { %v400_v53 = vmul.f32 %v394_v47, %v370_v37  ;;  %v401_v54 = vmul.f32 %v395_v48, %v371_v40  ;;  %vm336_vm3 = vmor %vm332_vm1, %vm320_vm5  ;;  %v372_v57 = vsel %vm317_vm13, 0.9, %v1105_v18  ;;  %381 = vst [vmem:[%s1315_s30 + $0x10] sm:$0xff] %v375_v55  ;;  %v409_v58 = vadd.f32 %v404_v50, %v403_v56 }
  0xd9   : > { %vm347_vm4 = vmor %vm332_vm1, %vm341_vm6  ;;  %v405_v59 = vsel %vm1323_vm2, 0.0, %v399_v43  ;;  %v402_v60 = vmul.f32 %v396_v51, %v372_v57  ;;  %vm428_vm9 = vcmask 7168  }
  0xda   : > { %vm364_vm5 = vmor %vm336_vm3, %vm356_vm8  ;;  %v411_v62 = vadd.f32 %v409_v58, %v405_v59 }
  0xdb   : > { %vm365_vm7 = vmor %vm332_vm1, %vm356_vm8  ;;  %v376_v61 = vsel %vm364_vm5, 0.0, %v370_v37  ;;  %v406_v63 = vsel %vm364_vm5, 0.0, %v400_v53 }
  0xdc   : > { %v377_v0 = vsel %vm365_vm7, 0.0, %v371_v40  ;;  %382 = vst [vmem:[%s1315_s30 + $0x18] sm:$0xff] %v376_v61  ;;  %v407_v1 = vsel %vm365_vm7, 0.0, %v401_v54  ;;  %vm366_vm6 = vmor %vm347_vm4, %vm356_vm8  ;;  %424 = vadd.xlane.f32.xlu0 %v411_v62 }
  0xdd   : > { %383 = vst [vmem:[%s1315_s30 + $0x20] sm:$0xff] %v377_v0  ;;  %v378_v2 = vsel %vm366_vm6, 0.0, %v372_v57  ;;  %v410_v3 = vadd.f32 %v407_v1, %v406_v63  ;;  %v408_v4 = vsel %vm366_vm6, 0.0, %v402_v60 }
  0xde   : > { %384 = vst [vmem:[%s1315_s30 + $0x28] sm:$0xff] %v378_v2 }
  0xdf   : > { %v412_v5 = vadd.f32 %v410_v3, %v408_v4 }
  0xe1   : > { %426 = vadd.xlane.f32.xlu1 %v412_v5 }
 0x169   : > { %v425_v6 = vpop.xlane.xlu0 %424  ;;  %442 = sbr.rel (!%p1177_p9) target bundleno = 397 (0x18d), region = 44 }
 0x16a   : > { %429 = vst.msk [vmem:[%s1354_s7] sm:$0xff] %vm428_vm9, %v425_v6 }
 0x16e   : > { %v427_v7 = vpop.xlane.xlu1 %426 }
 0x16f   : > { %430 = vst.msk [vmem:[%s1354_s7 + $0x8] sm:$0xff] %vm428_vm9, %v427_v7 }
 0x170   : > { %s1486_s10 = smov (!%p446_p8, %s445_s10), 2 }
 0x171   : > { %s1362_s11 = smul.u32 384, %s1486_s10 }
 0x173   : > { %s451_s21 = ssub.s32 768, %s1362_s11 }
 0x174   : > { %452 = vsyncadd %s432_s8, %s451_s21  ;;  %p770_p12 = scmp.ne.s32.totalorder %s1362_s11, 0  ;;  %s796_s22 = smul.u32 768, %s1059_s15 }
 0x175   : > { %s459_s27 = sshll.u32 %s1315_s30, 4  ;;  %s1107_s29 = smov [#allocation6]   ;;  %s1375_s27 = int_to_ptr.vmem [resolvable:$true] %s459_s27 }
 0x176   : > { %s1373_s18 = scalar_lea.hbm %s1460_s2, %s796_s22  ;;  %s953_s28 = scalar_lea.vmem %s1375_s27, %s1362_s11 }
 0x177   : > { %p954_p0 = scmp.ne.s32.totalorder %s1375_s27, %s953_s28  ;;  %s957_s5 = sshll.u32 %s1107_s29, 4  ;;  %s958_s5 = int_to_ptr.vmem [resolvable:$false] %s957_s5 }
 0x178   : > { %s959_s10 = scalar_lea.vmem %s958_s5, 1536  ;;  %p960_p2 = scmp.lt.s32.totalorder %s1375_s27, %s958_s5 }
 0x179   : > { %p955_p13 = pnand %p954_p0, %p770_p12  ;;  %p961_p4 = scmp.lt.s32.totalorder %s959_s10, %s953_s28 }
 0x17b   : > { %p956_p1 = pneg %p955_p13  ;;  %p962_p5 = por %p961_p4, %p960_p2 }
 0x17d   : > { %p963_p6 = pnand %p962_p5, %p956_p1 }
 0x17f   : > { %966 = shalt.err (!%p963_p6)
}
 0x180   : > { %s967_s30 = scalar_lea.hbm %s1373_s18, %s1362_s11  ;;  %s971_s6 = scalar_lea.hbm %s1460_s2, 1152 }
 0x181   : > { %p968_p3 = scmp.ne.s32.totalorder %s1373_s18, %s967_s30  ;;  %p972_p11 = scmp.lt.u32.totalorder %s1373_s18, %s1460_s2 }
 0x182   : > { %p973_p8 = scmp.lt.u32.totalorder %s971_s6, %s967_s30  ;;  %p975_p13 = scmp.lt.u32.totalorder %s967_s30, %s1373_s18 }
 0x183   : > { %p969_p7 = pnand %p968_p3, %p770_p12 }
 0x184   : > { %p974_p0 = por %p973_p8, %p972_p11 }
 0x185   : > { %p970_p10 = pneg %p969_p7 }
 0x186   : > { %p976_p1 = por %p975_p13, %p974_p0 }
 0x188   : > { %p977_p2 = pnand %p976_p1, %p970_p10 }
 0x18a   : > { %980 = shalt.err (!%p977_p2)
}
 0x18b   : > { %s1108_s29 = smov 384   ;;  %s1109_s5 = smov 24  }
 0x18c   : > { %465 = dma.vmem_to_hbm [thread:$0]  (%p770_p12), %s1375_s27, %s1362_s11, %s1373_s18, %s432_s8, %s1108_s29, %s1108_s29, %s1109_s5  }
 0x18d PF: > { %468 = sbr.rel (!%p1177_p9) target bundleno = 453 (0x1c5), region = 48  ;;  %s470_s10 = ssub.s32 (%p1177_p9), 3, %s1249_s4 }
 0x18e   : > { %s1411_s22 = scalar_lea.vmem (%p1177_p9), %s1461_s3, %s765_s23   ;;  %p471_p4 = scmp.lt.s32.totalorder (%p1177_p9), %s470_s10, 2 }
 0x194   : > { %s1488_s10 = smov (!%p471_p4, %s470_s10), 2 }
 0x195   : > { %s775_s6 = sshll.u32 %s1488_s10, 7 }
 0x196   : > { %p778_p5 = scmp.eq.s32.totalorder %s775_s6, 0 }
 0x197   : > { %s1417_s19 = sshrl.u32 (!%p778_p5), %s1488_s10, 1 }
 0x198   : > { %479 = sbr.rel (%p778_p5) target bundleno = 453 (0x1c5), region = 52  ;;  %p779_p9 = scmp.le.s32.totalorder (!%p778_p5), %s1417_s19, 0 }
 0x19f   : > { %680 = sbr.rel (%p779_p9) target bundleno = 432 (0x1b0), region = 150  ;;  %s1069_s15 = smov (!%p779_p9), %s1411_s22  }
 0x1a0   : > { %s1073_s24 = smov (!%p779_p9), %s1354_s7   ;;  %s1077_s4 = smov (!%p779_p9), 0  }
 0x1a1   : > { %s1081_s23 = smov (!%p779_p9), 0  }
 0x1a6 LB: >> { %v543_v8 = vld [vmem:[%s1075_s24] sm:$0xff]  ;;  %v545_v9 = vld [vmem:[%s1075_s24 + $0x8] sm:$0xff]  ;;  %s547_s8 = sadd.s32 1, %s1079_s4  ;;  %s537_s23 = sadd.s32 1, %s1083_s23   ;;  %s1083_s23 = sphi %s1081_s23, %s537_s23   ;;  %s1079_s4 = sphi %s1077_s4, %s1078_s4   ;;  %s1075_s24 = sphi %s1073_s24, %s552_s24   ;;  %s1071_s15 = sphi %s1069_s15, %s553_s15  }
 0x1a7   : >> { %544 = vst [vmem:[%s1071_s15] sm:$0xff] %v543_v8  ;;  %546 = vst [vmem:[%s1071_s15 + $0x8] sm:$0xff] %v545_v9  ;;  %p548_p12 = scmp.ge.s32.totalorder %s547_s8, %s1417_s19  ;;  %p536_p6 = scmp.ge.s32.totalorder %s537_s23, %s1417_s19 }
 0x1a9   : >> { %s1490_s8 = smov (%p548_p12, %s547_s8), 0  ;;  %539 = sbr.rel (!%p536_p6) target bundleno = 422 (0x1a6), region = 156 }
 0x1aa   : >> { %s780_s11 = sshll.u32 %s1490_s8, 4  ;;  %s1078_s4 = smov %s1490_s8  }
 0x1ab   : >> { %s552_s24 = scalar_lea.vmem %s1354_s7, %s780_s11 [#allocation7]   ;;  %s553_s15 = scalar_lea.vmem %s1411_s22, %s780_s11  }
 0x1b0 PF: > { %s1427_s27 = sand.u32 1, %s1488_s10   ;;  %s791_s18 = sshll.u32 %s1417_s19, 4 }
 0x1b1   : > { %s558_s9 = scalar_lea.vmem %s1354_s7, %s791_s18 [#allocation7]   ;;  %s560_s28 = scalar_lea.vmem %s1411_s22, %s791_s18  }
 0x1b2   : > { %p785_p3 = scmp.le.s32.totalorder %s1427_s27, 0 }
 0x1b3   : > { %s1085_s29 = smov (!%p785_p3), %s560_s28   ;;  %s1089_s5 = smov (!%p785_p3), %s558_s9  }
 0x1b4   : > { %694 = sbr.rel (%p785_p3) target bundleno = 453 (0x1c5), region = 161  ;;  %s1093_s30 = smov (!%p785_p3), 0  }
 0x1b5   : > { %s1097_s21 = smov (!%p785_p3), 0  }
 0x1bb LB: >> { %v570_v10 = vld [vmem:[%s1091_s5] sm:$0xff]  ;;  %s572_s10 = sadd.s32 1, %s1095_s30  ;;  %s564_s21 = sadd.s32 1, %s1099_s21   ;;  %s1099_s21 = sphi %s1097_s21, %s564_s21   ;;  %s1095_s30 = sphi %s1093_s30, %s1094_s30   ;;  %s1091_s5 = sphi %s1089_s5, %s577_s5   ;;  %s1087_s29 = sphi %s1085_s29, %s578_s29  }
 0x1bc   : >> { %571 = vst [vmem:[%s1087_s29] sm:$0xff] %v570_v10  ;;  %p573_p7 = scmp.ge.s32.totalorder %s572_s10, %s1427_s27  ;;  %p563_p10 = scmp.ge.s32.totalorder %s564_s21, %s1427_s27 }
 0x1be   : >> { %s1492_s10 = smov (%p573_p7, %s572_s10), 0  ;;  %566 = sbr.rel (!%p563_p10) target bundleno = 443 (0x1bb), region = 167 }
 0x1bf   : >> { %s786_s7 = sshll.u32 %s1492_s10, 3  ;;  %s1094_s30 = smov %s1492_s10  }
 0x1c0   : >> { %s577_s5 = scalar_lea.vmem %s558_s9, %s786_s7 [#allocation7]   ;;  %s578_s29 = scalar_lea.vmem %s560_s28, %s786_s7  }
 0x1c5 PF: > { %s590_s22 = sand.u32 1, %s1047_s12   ;;  %p1474_p11 = scmp.ne.s32.totalorder %s1465_s26, 0 }
 0x1c6   : > { %p1475_p8 = scmp.ge.s32.totalorder %s1067_s17, 2  ;;  %s591_s6 = scalar_lea.sflag [#allocation5], %s590_s22 }
 0x1c8   : > { %p800_p0 = pnand %p1475_p8, %p1474_p11 }
 0x1ca   : > { %1042 = dma.done.wait (!%p800_p0), %s591_s6, 768  }
 0x1cb   : > { %1044 = vsyncadd (!%p800_p0), %s591_s6, 4294966528  ;;  %s20_s17 = sadd.s32 1, %s1067_s17   ;;  %s1476_s12 = smov %s1051_s13 }
 0x1cc   : > { %p17_p13 = scmp.ge.s32.totalorder %s20_s17, 4   ;;  %s1477_s13 = smov %s1055_s14 }
 0x1cd   : > { %s1478_s14 = smov %s1182_s25  ;;  %s1479_s15 = smov %s1063_s16 }
 0x1ce   : > { %s1480_s16 = smov %s1482_s20  ;;  %19 = sbr.rel (!%p17_p13) target bundleno = 6 (0x6), region = 178 }
 0x1d5   :  { %603 = vsyncpa [#allocation4], 1 }
 0x1d6   :  { %605 = vsyncpa [#allocation4 + $0x1], 1 }
 0x1d7   :  { %606 = vsyncpa [#allocation5], 1 }
 0x1d8   :  { %608 = vsyncpa [#allocation5 + $0x1], 1 }

</bundles_post_ra>
